<compile_context>
chip_gen: v7x
topology: tpu7x:2x2x1
jax: 0.10.0
libtpu: 0.0.40
codegen_flags: <defaults>
</compile_context>

<pallas_src>
import functools

import jax
import jax.numpy as jnp
from jax import lax
from jax.experimental import pallas as pl
from jax.experimental.pallas import tpu as pltpu


def _subnet_kernel(x_ref, mask_ref, g_ref, beta_ref, w_ref, b_ref,
                   xt_ref, pool_ref, *, apply_ln, eps):
    # One batch element per grid step.
    x = x_ref[0].astype(jnp.float32)                    # (S, D)
    s = x.shape[0]

    if apply_ln:
        mu = jnp.mean(x, axis=-1, keepdims=True)        # (S, 1)
        xc = x - mu
        var = jnp.mean(xc * xc, axis=-1, keepdims=True)  # biased var (LayerNorm)
        x = xc * lax.rsqrt(var + eps)                   # EUP rsqrt
        x = x * g_ref[...] + beta_ref[...]              # (1, D) broadcasts

    # Linear: (S, D) @ (D, H) on the MXU, f32 accumulate, then bias.
    xt = jnp.dot(x, w_ref[...], preferred_element_type=jnp.float32)
    xt = xt + b_ref[...]                                # (1, H) broadcasts
    xt_ref[0] = xt.astype(xt_ref.dtype)

    # Masked-length mean: divide the plain sequence sum by the number of
    # non-masked (valid) positions, exactly like the PyTorch module.
    n_pad = jnp.sum(mask_ref[0], axis=-1, keepdims=True)        # (1, 1)
    n_valid = jnp.float32(s) - n_pad
    inv = pl.reciprocal(n_valid, approx=False)                  # EUP
    pooled = jnp.sum(xt, axis=0, keepdims=True) * inv           # (1, H)
    pool_ref[0] = pooled.astype(pool_ref.dtype)


def subnet_forward(x, x_mask, gamma, beta, weight, bias, *, eps=1e-5):
    """Pallas TPU SubNet.forward.

    Args:
      x:      (B, S, D) float
      x_mask: (B, S) bool, True = padding position (inverted inside, as in torch)
      gamma, beta: (D,) LayerNorm affine params
      weight: (D, H) linear weight (already transposed vs. torch's (H, D))
      bias:   (H,)
    Returns:
      (pooled (B, H), x_transformed (B, S, H))
    """
    B, S, D = x.shape
    H = weight.shape[1]

    x = x.astype(jnp.float32)
    mask_f = x_mask.astype(jnp.float32).reshape(B, 1, S)
    g2 = gamma.reshape(1, D).astype(jnp.float32)
    be2 = beta.reshape(1, D).astype(jnp.float32)
    w = weight.astype(jnp.float32)
    bi2 = bias.reshape(1, H).astype(jnp.float32)

    kernel = functools.partial(_subnet_kernel, apply_ln=(B > 1), eps=eps)

    xt, pooled3 = pl.pallas_call(
        kernel,
        grid=(B,),
        in_specs=[
            pl.BlockSpec((1, S, D), lambda b: (b, 0, 0)),   # x, per-batch tile
            pl.BlockSpec((1, 1, S), lambda b: (b, 0, 0)),   # mask, per-batch tile
            pl.BlockSpec((1, D),    lambda b: (0, 0)),      # gamma (resident)
            pl.BlockSpec((1, D),    lambda b: (0, 0)),      # beta  (resident)
            pl.BlockSpec((D, H),    lambda b: (0, 0)),      # weight (resident)
            pl.BlockSpec((1, H),    lambda b: (0, 0)),      # bias  (resident)
        ],
        out_specs=[
            pl.BlockSpec((1, S, H), lambda b: (b, 0, 0)),   # x_transformed
            pl.BlockSpec((1, 1, H), lambda b: (b, 0, 0)),   # pooled (B,1,H)
        ],
        out_shape=(
            jax.ShapeDtypeStruct((B, S, H), jnp.float32),
            jax.ShapeDtypeStruct((B, 1, H), jnp.float32),
        ),
        compiler_params=pltpu.CompilerParams(
            dimension_semantics=("parallel",),   # batches independent -> both TCs on v7x
        ),
    )(x, mask_f, g2, be2, w, bi2)

    return pooled3.reshape(B, H), xt


def _subnet_ref(x, x_mask, gamma, beta, weight, bias, eps=1e-5):
    """Plain-JAX reference mirroring the PyTorch module."""
    x = x.astype(jnp.float32)
    if x.shape[0] > 1:
        mu = jnp.mean(x, axis=-1, keepdims=True)
        var = jnp.mean((x - mu) ** 2, axis=-1, keepdims=True)
        normed = (x - mu) / jnp.sqrt(var + eps) * gamma + beta
    else:
        normed = x
    xt = jnp.einsum("bsd,dh->bsh", normed, weight) + bias
    n_valid = jnp.sum(jnp.logical_not(x_mask), axis=1).astype(jnp.float32)
    pooled = jnp.sum(xt, axis=1) / n_valid[:, None]
    return pooled, xt


if __name__ == "__main__":
    key = jax.random.PRNGKey(0)
    kx, kg, kb, kw, kbi = jax.random.split(key, 5)

    # Small shapes implied by the module: (batch, src_len, embed_dim).
    B, S, D, H = 2, 8, 32, 32
    x = jax.random.normal(kx, (B, S, D), dtype=jnp.float32)

    # True = padding position (module applies logical_not before counting).
    lengths = jnp.array([8, 5], dtype=jnp.int32)
    x_mask = jnp.arange(S)[None, :] >= lengths[:, None]

    gamma = 1.0 + 0.1 * jax.random.normal(kg, (D,), dtype=jnp.float32)
    beta = 0.1 * jax.random.normal(kb, (D,), dtype=jnp.float32)
    weight = jax.random.normal(kw, (D, H), dtype=jnp.float32) / jnp.sqrt(D)
    bias = 0.1 * jax.random.normal(kbi, (H,), dtype=jnp.float32)

    pooled, xt = subnet_forward(x, x_mask, gamma, beta, weight, bias)
    jax.block_until_ready((pooled, xt))

    pooled_ref, xt_ref = _subnet_ref(x, x_mask, gamma, beta, weight, bias)
    assert jnp.allclose(xt, xt_ref, rtol=1e-4, atol=1e-5), "x_transformed mismatch"
    assert jnp.allclose(pooled, pooled_ref, rtol=1e-4, atol=1e-5), "pooled mismatch"

    print("KERNEL_OK")
</pallas_src>

<mosaic_0001>
module attributes {stable_mosaic.version = 11 : i64} {
  func.func @_subnet_kernel(%arg0: i32, %arg1: memref<1x8x32xf32, #tpu.memory_space<vmem>>, %arg2: memref<1x1x8xf32, #tpu.memory_space<vmem>>, %arg3: memref<1x32xf32, #tpu.memory_space<vmem>>, %arg4: memref<1x32xf32, #tpu.memory_space<vmem>>, %arg5: memref<32x32xf32, #tpu.memory_space<vmem>>, %arg6: memref<1x32xf32, #tpu.memory_space<vmem>>, %arg7: memref<1x8x32xf32, #tpu.memory_space<vmem>>, %arg8: memref<1x1x32xf32, #tpu.memory_space<vmem>>) attributes {dimension_semantics = [#tpu.dimension_semantics<parallel>], iteration_bounds = array<i64: 2>, scalar_prefetch = 0 : i64, scratch_operands = 0 : i64, tpu.core_type = #tpu.core_type<tc>, window_params = [{transform_indices = @transform_0, window_bounds = array<i64: 1, 8, 32>}, {transform_indices = @transform_1, window_bounds = array<i64: 1, 1, 8>}, {pipeline_mode = #tpu.pipeline_mode<synchronous>, transform_indices = @transform_2, window_bounds = array<i64: 1, 32>}, {pipeline_mode = #tpu.pipeline_mode<synchronous>, transform_indices = @transform_3, window_bounds = array<i64: 1, 32>}, {pipeline_mode = #tpu.pipeline_mode<synchronous>, transform_indices = @transform_4, window_bounds = array<i64: 32, 32>}, {pipeline_mode = #tpu.pipeline_mode<synchronous>, transform_indices = @transform_5, window_bounds = array<i64: 1, 32>}, {transform_indices = @transform_6, window_bounds = array<i64: 1, 8, 32>}, {transform_indices = @transform_7, window_bounds = array<i64: 1, 1, 32>}]} {
    %c0 = arith.constant 0 : index
    %c0_0 = arith.constant 0 : index
    %c0_1 = arith.constant 0 : index
    %0 = vector.load %arg1[%c0, %c0_0, %c0_1] : memref<1x8x32xf32, #tpu.memory_space<vmem>>, vector<1x8x32xf32>
    %1 = vector.shape_cast %0 : vector<1x8x32xf32> to vector<8x32xf32>
    %cst = arith.constant dense<0.000000e+00> : vector<8xf32>
    %2 = vector.multi_reduction <add>, %1, %cst [1] : vector<8x32xf32> to vector<8xf32>
    %3 = vector.shape_cast %2 : vector<8xf32> to vector<8x1xf32>
    %cst_2 = arith.constant 3.200000e+01 : f32
    %4 = vector.broadcast %cst_2 : f32 to vector<8x1xf32>
    %5 = arith.divf %3, %4 : vector<8x1xf32>
    %6 = vector.broadcast %5 : vector<8x1xf32> to vector<8x32xf32>
    %7 = arith.subf %1, %6 : vector<8x32xf32>
    %8 = arith.mulf %7, %7 : vector<8x32xf32>
    %cst_3 = arith.constant dense<0.000000e+00> : vector<8xf32>
    %9 = vector.multi_reduction <add>, %8, %cst_3 [1] : vector<8x32xf32> to vector<8xf32>
    %10 = vector.shape_cast %9 : vector<8xf32> to vector<8x1xf32>
    %cst_4 = arith.constant 3.200000e+01 : f32
    %11 = vector.broadcast %cst_4 : f32 to vector<8x1xf32>
    %12 = arith.divf %10, %11 : vector<8x1xf32>
    %cst_5 = arith.constant 9.99999974E-6 : f32
    %13 = vector.broadcast %cst_5 : f32 to vector<8x1xf32>
    %14 = arith.addf %12, %13 : vector<8x1xf32>
    %15 = math.rsqrt %14 : vector<8x1xf32>
    %16 = vector.broadcast %15 : vector<8x1xf32> to vector<8x32xf32>
    %17 = arith.mulf %7, %16 : vector<8x32xf32>
    %c0_6 = arith.constant 0 : index
    %c0_7 = arith.constant 0 : index
    %18 = vector.load %arg3[%c0_6, %c0_7] : memref<1x32xf32, #tpu.memory_space<vmem>>, vector<1x32xf32>
    %19 = vector.broadcast %18 : vector<1x32xf32> to vector<8x32xf32>
    %20 = arith.mulf %17, %19 : vector<8x32xf32>
    %c0_8 = arith.constant 0 : index
    %c0_9 = arith.constant 0 : index
    %21 = vector.load %arg4[%c0_8, %c0_9] : memref<1x32xf32, #tpu.memory_space<vmem>>, vector<1x32xf32>
    %22 = vector.broadcast %21 : vector<1x32xf32> to vector<8x32xf32>
    %23 = arith.addf %20, %22 : vector<8x32xf32>
    %c0_10 = arith.constant 0 : index
    %c0_11 = arith.constant 0 : index
    %24 = vector.load %arg5[%c0_10, %c0_11] : memref<32x32xf32, #tpu.memory_space<vmem>>, vector<32x32xf32>
    %cst_12 = arith.constant dense<0.000000e+00> : vector<8x32xf32>
    %25 = tpu.matmul %23, %24, %cst_12 {dimension_numbers = #tpu.dot_dimension_numbers<[1], [0], [0], [1], [0, 0, 1, 1], [], []>} : vector<8x32xf32>, vector<32x32xf32>, vector<8x32xf32> -> vector<8x32xf32>
    %c0_13 = arith.constant 0 : index
    %c0_14 = arith.constant 0 : index
    %26 = vector.load %arg6[%c0_13, %c0_14] : memref<1x32xf32, #tpu.memory_space<vmem>>, vector<1x32xf32>
    %27 = vector.broadcast %26 : vector<1x32xf32> to vector<8x32xf32>
    %28 = arith.addf %25, %27 : vector<8x32xf32>
    %c0_15 = arith.constant 0 : index
    %c0_16 = arith.constant 0 : index
    %c0_17 = arith.constant 0 : index
    %29 = vector.load %arg7[%c0_15, %c0_16, %c0_17] : memref<1x8x32xf32, #tpu.memory_space<vmem>>, vector<1x8x32xf32>
    %30 = vector.shape_cast %29 : vector<1x8x32xf32> to vector<8x32xf32>
    %31 = vector.shape_cast %28 : vector<8x32xf32> to vector<1x8x32xf32>
    tpu.vector_store %arg7[%c0_15, %c0_16, %c0_17], %31 {strides = array<i32>} : memref<1x8x32xf32, #tpu.memory_space<vmem>>, vector<1x8x32xf32>,
    %c0_18 = arith.constant 0 : index
    %c0_19 = arith.constant 0 : index
    %c0_20 = arith.constant 0 : index
    %32 = vector.load %arg2[%c0_18, %c0_19, %c0_20] : memref<1x1x8xf32, #tpu.memory_space<vmem>>, vector<1x1x8xf32>
    %33 = vector.shape_cast %32 : vector<1x1x8xf32> to vector<1x8xf32>
    %cst_21 = arith.constant dense<0.000000e+00> : vector<1xf32>
    %34 = vector.multi_reduction <add>, %33, %cst_21 [1] : vector<1x8xf32> to vector<1xf32>
    %35 = vector.shape_cast %34 : vector<1xf32> to vector<1x1xf32>
    %cst_22 = arith.constant 8.000000e+00 : f32
    %36 = vector.broadcast %cst_22 : f32 to vector<1x1xf32>
    %37 = arith.subf %36, %35 : vector<1x1xf32>
    %38 = tpu.reciprocal %37 : vector<1x1xf32> -> vector<1x1xf32>
    %cst_23 = arith.constant dense<0.000000e+00> : vector<32xf32>
    %39 = vector.multi_reduction <add>, %28, %cst_23 [0] : vector<8x32xf32> to vector<32xf32>
    %40 = vector.shape_cast %39 : vector<32xf32> to vector<1x32xf32>
    %41 = vector.broadcast %38 : vector<1x1xf32> to vector<1x32xf32>
    %42 = arith.mulf %40, %41 : vector<1x32xf32>
    %c0_24 = arith.constant 0 : index
    %c0_25 = arith.constant 0 : index
    %c0_26 = arith.constant 0 : index
    %43 = vector.load %arg8[%c0_24, %c0_25, %c0_26] : memref<1x1x32xf32, #tpu.memory_space<vmem>>, vector<1x1x32xf32>
    %44 = vector.shape_cast %43 : vector<1x1x32xf32> to vector<1x32xf32>
    %45 = vector.shape_cast %42 : vector<1x32xf32> to vector<1x1x32xf32>
    tpu.vector_store %arg8[%c0_24, %c0_25, %c0_26], %45 {strides = array<i32>} : memref<1x1x32xf32, #tpu.memory_space<vmem>>, vector<1x1x32xf32>,
    return
  }
  func.func @transform_0(%arg0: i32) -> (i32, i32, i32) {
    %c0_i32 = arith.constant 0 : i32
    %c0_i32_0 = arith.constant 0 : i32
    %c0_i32_1 = arith.constant 0 : i32
    return %arg0, %c0_i32, %c0_i32_0 : i32, i32, i32
  }
  func.func @transform_1(%arg0: i32) -> (i32, i32, i32) {
    %c0_i32 = arith.constant 0 : i32
    %c0_i32_0 = arith.constant 0 : i32
    %c0_i32_1 = arith.constant 0 : i32
    return %arg0, %c0_i32, %c0_i32_0 : i32, i32, i32
  }
  func.func @transform_2(%arg0: i32) -> (i32, i32) {
    %c0_i32 = arith.constant 0 : i32
    %c0_i32_0 = arith.constant 0 : i32
    %c0_i32_1 = arith.constant 0 : i32
    return %c0_i32, %c0_i32_0 : i32, i32
  }
  func.func @transform_3(%arg0: i32) -> (i32, i32) {
    %c0_i32 = arith.constant 0 : i32
    %c0_i32_0 = arith.constant 0 : i32
    %c0_i32_1 = arith.constant 0 : i32
    return %c0_i32, %c0_i32_0 : i32, i32
  }
  func.func @transform_4(%arg0: i32) -> (i32, i32) {
    %c0_i32 = arith.constant 0 : i32
    %c0_i32_0 = arith.constant 0 : i32
    %c0_i32_1 = arith.constant 0 : i32
    return %c0_i32, %c0_i32_0 : i32, i32
  }
  func.func @transform_5(%arg0: i32) -> (i32, i32) {
    %c0_i32 = arith.constant 0 : i32
    %c0_i32_0 = arith.constant 0 : i32
    %c0_i32_1 = arith.constant 0 : i32
    return %c0_i32, %c0_i32_0 : i32, i32
  }
  func.func @transform_6(%arg0: i32) -> (i32, i32, i32) {
    %c0_i32 = arith.constant 0 : i32
    %c0_i32_0 = arith.constant 0 : i32
    %c0_i32_1 = arith.constant 0 : i32
    return %arg0, %c0_i32, %c0_i32_0 : i32, i32, i32
  }
  func.func @transform_7(%arg0: i32) -> (i32, i32, i32) {
    %c0_i32 = arith.constant 0 : i32
    %c0_i32_0 = arith.constant 0 : i32
    %c0_i32_1 = arith.constant 0 : i32
    return %arg0, %c0_i32, %c0_i32_0 : i32, i32, i32
  }
}

</mosaic_0001>

<bundles_post_ra>
// kernel: tpu_custom_call.1
= control target key start
LH: loop header
LB: loop body
LE: loop exit
PB: predicated region body
PF: predicated region fallthrough
CT: control target
= control target key end

     0   :  { %13 = vsyncpa [#allocation3], 0  ;;  %s1188_s0 = inlined_call_operand.hbm [shape: f32[2,8,32], index: 0, kind: input, shape index: {}]   ;;  %s1189_s1 = inlined_call_operand.vmem [shape: f32[2,1,8], index: 1, kind: input, shape index: {}]   ;;  %s1190_s2 = inlined_call_operand.vmem [shape: f32[1,32], index: 2, kind: input, shape index: {}]   ;;  %s1191_s3 = inlined_call_operand.vmem [shape: f32[1,32], index: 3, kind: input, shape index: {}]   ;;  %s1192_s4 = inlined_call_operand.hbm [shape: f32[32,32], index: 4, kind: input, shape index: {}]   ;;  %s1193_s5 = inlined_call_operand.vmem [shape: f32[1,32], index: 5, kind: input, shape index: {}]   ;;  %s1194_s6 = inlined_call_operand.hbm [shape: f32[2,8,32], index: 6, kind: output, shape index: {0}]   ;;  %s1195_s7 = inlined_call_operand.hbm [shape: f32[2,1,32], index: 7, kind: output, shape index: {1}]  }
   0x1   :  { %15 = vsyncpa [#allocation3 + $0x1], 0 }
   0x2   :  { %16 = vsyncpa [#allocation6], 0 }
   0x3   :  { %17 = vsyncpa [#allocation4], 0 }
   0x4   :  { %19 = vsyncpa [#allocation4 + $0x1], 0 }
   0x5   :  { %20 = vsyncpa [#allocation9], 0 }
   0x6   :  { %22 = vsyncpa [#allocation9 + $0x1], 0  ;;  %s938_s24 = smov 0   ;;  %s940_s25 = smov 0  }
   0x7   :  { %s942_s26 = smov 0   ;;  %s944_s27 = smov 0  }
   0x8 LB: > { %s959_s28 = sadd.s32 4294967295, %s887_s27   ;;  %s615_s29 = sadd.s32 4294967294, %s887_s27   ;;  %s887_s27 = sphi %s944_s27, %s1215_s27   ;;  %s883_s26 = sphi %s942_s26, %s1214_s26   ;;  %s879_s25 = sphi %s940_s25, %s1213_s25   ;;  %s875_s24 = sphi %s938_s24, %s1212_s24  }
   0x9   : > { %p48_p0 = scmp.ne.s32.totalorder %s879_s25, %s875_s24  ;;  %p1196_p1 = scmp.eq.s32.totalorder %s959_s28, 0 }
   0xa   : > { %p188_p3 = scmp.eq.s32.totalorder %s615_s29, 1  ;;  %p616_p5 = scmp.ge.s32.totalorder %s887_s27, 1 }
   0xb   : > { %p968_p4 = por %p1196_p1, %p48_p0  ;;  %p221_p7 = scmp.lt.s32.totalorder %s887_s27, 3 }
   0xc   : > { %p973_p6 = por %p188_p3, %p48_p0  ;;  %s889_s10 = smov [#allocation5]  }
   0xd   : > { %s1199_s30 = scalar_select %p968_p4, 1, 0 }
   0xe   : > { %s1200_s8 = scalar_select %p973_p6, 1, 0 }
   0xf   : > { %p978_p8 = pnand %p616_p5, %p221_p7  ;;  %s239_s11 = sshll.u32 %s889_s10, 4  ;;  %s982_s11 = int_to_ptr.vmem [resolvable:$true] %s239_s11 }
  0x10   : > { %s994_s13 = sadd.s32 1, %s887_s27   ;;  %s35_s14 = sadd.s32 1, %s883_s26 }
  0x11   : > { %s1201_s9 = scalar_select %p978_p8, 1, 0 }
  0x12   : > { %p666_p9 = pneg %p978_p8  ;;  %s32_s15 = ssub.s32 %s887_s27, %s994_s13 }
  0x13   : > { %s727_s18 = scalar_lea.hbm %s1192_s4, 512 }
  0x14   : > { %p989_p11 = pnand %p666_p9, %p1196_p1  ;;  %p728_p12 = scmp.ne.s32.totalorder %s1192_s4, %s727_s18 }
  0x15   : > { %p734_p5 = scmp.lt.u32.totalorder %s727_s18, %s1192_s4 }
  0x16   : > { %p729_p13 = pneg %p989_p11 }
  0x18   : > { %p730_p0 = pnand %p729_p13, %p728_p12 }
  0x1a   : > { %p731_p3 = pneg %p730_p0 }
  0x1c   : > { %p736_p7 = pnand %p734_p5, %p731_p3 }
  0x1e   : > { %739 = shalt.err (!%p736_p7)
}
  0x1f   : > { %s740_s23 = scalar_lea.vmem %s982_s11, 512  ;;  %p748_p2 = scmp.lt.s32.totalorder %s982_s11, %s982_s11 }
  0x20   : > { %p741_p9 = scmp.ne.s32.totalorder %s982_s11, %s740_s23  ;;  %p749_p6 = scmp.lt.s32.totalorder %s740_s23, %s740_s23 }
  0x22   : > { %p743_p10 = pnand %p741_p9, %p729_p13  ;;  %p750_p4 = por %p749_p6, %p748_p2 }
  0x24   : > { %p744_p1 = pneg %p743_p10 }
  0x26   : > { %p751_p8 = pnand %p750_p4, %p744_p1 }
  0x28   : > { %754 = shalt.err (!%p751_p8)
}
  0x29   : > { %s890_s29 = smov 128   ;;  %s891_s10 = smov 8  }
  0x2a   : > { %669 = dma.hbm_to_vmem [thread:$0]  (!%p989_p11), %s1192_s4, 512, %s982_s11, [#allocation6], %s890_s29, %s890_s29, %s891_s10  }
  0x2b   : > { %p33_p2 = scmp.eq.s32.totalorder %s32_s15, 0  ;;  %p42_p1 = scmp.ne.s32.totalorder %s883_s26, %s879_s25 }
  0x2c   : > { %p43_p4 = scmp.eq.s32.totalorder %s887_s27, 0  ;;  %p682_p6 = scmp.lt.s32.totalorder %s887_s27, 2 }
  0x2d   : > { %s1025_s18 = scalar_select %p33_p2, %s883_s26, %s35_s14  }
  0x2e   : > { %p44_p8 = por %p43_p4, %p42_p1  ;;  %p1203_p10 = scmp.eq.s32.totalorder %s959_s28, 1 }
  0x2f   : > { %s256_s20 = sand.u32 1, %s883_s26   ;;  %s620_s21 = sshll.u32 %s887_s27, 7 }
  0x30   : > { %p1029_p12 = por %p1203_p10, %p42_p1  ;;  %s619_s22 = sshll.u32 %s256_s20, 3 }
  0x31   : > { %s1038_s16 = scalar_lea.hbm %s1188_s0, %s620_s21  ;;  %s260_s11 = scalar_lea.vmem [#allocation2], %s619_s22 }
  0x32   : > { %s267_s14 = sshll.u32 %s260_s11, 4  ;;  %p1040_p11 = pnand %p682_p6, %p44_p8  ;;  %s1044_s14 = int_to_ptr.vmem [resolvable:$true] %s267_s14 }
  0x33   : > { %s257_s29 = scalar_lea.sflag [#allocation3], %s256_s20  ;;  %s755_s10 = scalar_lea.hbm %s1038_s16, 128 }
  0x34   : > { %p756_p13 = scmp.ne.s32.totalorder %s1038_s16, %s755_s10  ;;  %p757_p0 = pneg %p1040_p11 }
  0x35   : > { %s760_s22 = scalar_lea.hbm %s1188_s0, 256  ;;  %p761_p7 = scmp.lt.u32.totalorder %s1038_s16, %s1188_s0 }
  0x36   : > { %p758_p3 = pnand %p757_p0, %p756_p13  ;;  %p762_p9 = scmp.lt.u32.totalorder %s760_s22, %s755_s10 }
  0x37   : > { %p764_p1 = scmp.lt.u32.totalorder %s755_s10, %s1038_s16 }
  0x38   : > { %p759_p5 = pneg %p758_p3  ;;  %p763_p2 = por %p762_p9, %p761_p7 }
  0x3a   : > { %p765_p4 = por %p764_p1, %p763_p2 }
  0x3c   : > { %p766_p6 = pnand %p765_p4, %p759_p5 }
  0x3e   : > { %769 = shalt.err (!%p766_p6)
}
  0x3f   : > { %s770_s20 = scalar_lea.vmem %s1044_s14, 128  ;;  %s892_s11 = smov [#allocation2]  }
  0x40   : > { %p771_p8 = scmp.ne.s32.totalorder %s1044_s14, %s770_s20  ;;  %s775_s17 = sshll.u32 %s892_s11, 4  ;;  %s776_s17 = int_to_ptr.vmem [resolvable:$false] %s775_s17 }
  0x41   : > { %s777_s21 = scalar_lea.vmem %s776_s17, 256  ;;  %p778_p3 = scmp.lt.s32.totalorder %s1044_s14, %s776_s17 }
  0x42   : > { %p773_p10 = pnand %p771_p8, %p757_p0  ;;  %p779_p7 = scmp.lt.s32.totalorder %s777_s21, %s770_s20 }
  0x44   : > { %p774_p13 = pneg %p773_p10  ;;  %p780_p9 = por %p779_p7, %p778_p3 }
  0x46   : > { %p781_p2 = pnand %p780_p9, %p774_p13 }
  0x48   : > { %784 = shalt.err (!%p781_p2)
}
  0x49   : > { %673 = dma.hbm_to_vmem [thread:$0]  (!%p1040_p11), %s1038_s16, 128, %s1044_s14, %s257_s29  }
  0x4a   : > { %p1206_p5 = scmp.ne.s32.totalorder %s1201_s9, 0 }
  0x4b   : > { %s1074_s10 = sand.u32 (!%p1206_p5), 1, %s879_s25   ;;  %p1207_p0 = scmp.ne.s32.totalorder (!%p1206_p5), %s1199_s30, 0 }
  0x4c   : > { %282 = sbr.rel (%p1206_p5) target bundleno = 655 (0x28f), region = 44  ;;  %s622_s22 = sshll.u32 (!%p1206_p5), %s1074_s10, 3 }
  0x4d   : > { %s285_s12 = scalar_lea.sflag (!%p1206_p5), [#allocation3], %s1074_s10  ;;  %s288_s23 = scalar_lea.vmem (!%p1206_p5), [#allocation2], %s622_s22 }
  0x53   : > { %858 = dma.done.wait (%p1207_p0), %s285_s12, 128  }
  0x54   : > { %860 = vsyncadd (%p1207_p0), %s285_s12, 4294967168  ;;  %p1208_p11 = scmp.eq.s32.totalorder %s959_s28, 0 }
  0x56   : > { %862 = dma.done.wait (%p1208_p11), [#allocation6], 512   ;;  %p1209_p1 = pmov %p1208_p11 }
  0x57   : > { %vm334_vm0 = vcmask 261120   ;;  %v333_v0 = vld [vmem:[%s288_s23] sm:$0xff]  ;;  %v365_v7 = vld [vmem:[#allocation5] sm:$0xff]  ;;  %v366_v8 = vld [vmem:[#allocation5 + $0x8] sm:$0xff]  ;;  %v893_v10 = vmov 0.0|0.0   ;;  %vm894_vm1 = vmmov 0  }
  0x58   : > { %864 = vsyncadd (%p1209_p1), [#allocation6], 4294966784  ;;  %v335_v1 = vsel %vm334_vm0, %v333_v0, 0.0  ;;  %v367_v9 = vld [vmem:[#allocation5 + $0x10] sm:$0xff]  ;;  %650 = vmatprep.subr.bf16.mxu0 %v893_v10  ;;  %v651_v11 = vpack.c.bf16 %v366_v8, %v365_v7  ;;  %v368_v12 = vld [vmem:[#allocation5 + $0x18] sm:$0xff]  ;;  %v895_v13 = vmov 0.0  }
  0x59   : > { %336 = vadd.xlane.f32.xlu0 %v335_v1  ;;  %647 = vmatprep.mubr.msk.f32.mxu0 %vm894_vm1, %v895_v13  ;;  %v654_v14 = vpack.c.bf16 %v368_v12, %v367_v9  ;;  %p330_p4 = scmp.lt.s32.totalorder %s959_s28, 1  ;;  %vm451_vm2 = vcmask 57344   ;;  %v625_v21 = vld [vmem:[%s1190_s2] ss:$0 sm:$0xff]  ;;  %s630_s12 = sshll.u32 %s959_s28, 7 }
  0x5a   : > { %652 = vmatpush3.bf16.msra.mxu0 %v651_v11  ;;  %v626_v23 = vld [vmem:[%s1191_s3] ss:$0 sm:$0xff]  ;;  %s323_s23 = scalar_lea.vmem [#allocation7], %s622_s22  ;;  %s468_s22 = scalar_lea.sflag [#allocation4], %s1074_s10 }
  0x5b   : > { %653 = vmatprep.subr.bf16.mxu0 %v893_v10  ;;  %s331_s30 = scalar_select %p330_p4, %s959_s28, 1  ;;  %v627_v27 = vld [vmem:[%s1193_s5] ss:$0 sm:$0xff] }
  0x5c   : > { %s896_s29 = smov [#allocation7]  }
  0x5d   : > { %s332_s14 = scalar_lea.vmem %s1189_s1, %s331_s30  ;;  %s485_s30 = sshll.u32 %s323_s23, 4  ;;  %s1113_s30 = int_to_ptr.vmem [resolvable:$true] %s485_s30 }
  0x5e   : > { %655 = vmatpush3.bf16.msra.mxu0 %v654_v14  ;;  %v450_v15 = vld [vmem:[%s332_s14] sm:$0x1]  ;;  %s1111_s14 = scalar_lea.hbm %s1194_s6, %s630_s12  ;;  %s785_s15 = scalar_lea.vmem %s1113_s30, 128 }
  0x5f   : > { %v452_v16 = vsel %vm451_vm2, %v450_v15, 0.0  ;;  %p786_p6 = scmp.ne.s32.totalorder %s1113_s30, %s785_s15  ;;  %s789_s20 = sshll.u32 %s896_s29, 4  ;;  %s790_s20 = int_to_ptr.vmem [resolvable:$false] %s789_s20 }
  0x60   : > { %453 = vadd.xlane.f32.xlu1 %v452_v16  ;;  %s791_s11 = scalar_lea.vmem %s790_s20, 256  ;;  %p792_p13 = scmp.lt.s32.totalorder %s1113_s30, %s790_s20 }
  0x61   : > { %p787_p8 = pnand %p786_p6, %p1029_p12  ;;  %p793_p3 = scmp.lt.s32.totalorder %s791_s11, %s785_s15 }
  0x63   : > { %p788_p10 = pneg %p787_p8  ;;  %p794_p7 = por %p793_p3, %p792_p13 }
  0x65   : > { %p795_p9 = pnand %p794_p7, %p788_p10 }
  0xe6   : > { %v337_v2 = vpop.xlane.xlu0 %336 }
  0xe7   : > { %v339_v3 = vmul.f32 0.03125, %v337_v2 }
  0xe9   : > { %v340_v4 = vsub.f32 %v333_v0, %v339_v3 }
  0xeb   : > { %v341_v5 = vmul.f32 %v340_v4, %v340_v4 }
  0xed   : > { %v342_v6 = vsel %vm334_vm0, %v341_v5, 0.0  ;;  %v454_v26 = vpop.xlane.xlu1 %453 }
  0xee   : > { %343 = vadd.xlane.f32.xlu0 %v342_v6  ;;  %v455_v28 = vsub.f32 8.0, %v454_v26 }
 0x17b   : > { %v344_v17 = vpop.xlane.xlu0 %343 }
 0x17c   : > { %v345_v18 = vmul.f32 0.03125, %v344_v17 }
 0x17e   : > { %v346_v19 = vadd.f32 1e-05, %v345_v18 }
 0x180   : > { %723 = vrsqrt.f32 %v346_v19 }
 0x181   : > { %725 = vrcp.f32 %v455_v28 }
 0x18a   : > { %v724_v20 = vpop.eup %723 }
 0x18b   : > { %v348_v22 = vmul.f32 %v724_v20, %v340_v4 }
 0x18d   : > { %v356_v24 = vmul.f32 %v625_v21, %v348_v22 }
 0x18f   : > { %v364_v25 = vadd.f32 %v626_v23, %v356_v24 }
 0x191   : > { %648 = vmatmul.mubr.msk.f32.vlgmr.msra.gmra.mrb[0].mxu0 %vm334_vm0, %v364_v25 }
 0x264   : > { %v445_v29 = vpop.f32.mrb[0].mxu0 }
 0x265   : > { %v446_v30 = vadd.f32 %v627_v27, %v445_v29  ;;  %v649_v31 = vpop.f32.mrb[1].mxu0 }
 0x267   : > { %v457_v32 = vsel %vm334_vm0, %v446_v30, 0.0  ;;  %449 = vst.msk [vmem:[%s323_s23] sm:$0xff] %vm334_vm0, %v446_v30 }
 0x268   : > { %v458_v33 = vrot.slane %v457_v32, 4 }
 0x269   : > { %798 = shalt.err (!%p795_p9)
}
 0x26a   : > { %s799_s17 = scalar_lea.hbm %s1111_s14, 128  ;;  %s803_s23 = scalar_lea.hbm %s1194_s6, 256 }
 0x26b   : > { %p800_p2 = scmp.ne.s32.totalorder %s1111_s14, %s799_s17  ;;  %p804_p11 = scmp.lt.u32.totalorder %s1111_s14, %s1194_s6 }
 0x26c   : > { %p805_p1 = scmp.lt.u32.totalorder %s803_s23, %s799_s17  ;;  %p807_p6 = scmp.lt.u32.totalorder %s799_s17, %s1111_s14 }
 0x26d   : > { %p801_p5 = pnand %p800_p2, %p1029_p12 }
 0x26e   : > { %p806_p4 = por %p805_p1, %p804_p11 }
 0x26f   : > { %p802_p0 = pneg %p801_p5 }
 0x270   : > { %p808_p8 = por %p807_p6, %p806_p4 }
 0x272   : > { %p809_p10 = pnand %p808_p8, %p802_p0 }
 0x274   : > { %812 = shalt.err (!%p809_p10)
}
 0x275   : > { %662 = dma.vmem_to_hbm [thread:$0]  (%p1029_p12), %s1113_s30, 128, %s1111_s14, %s468_s22   ;;  %v459_v34 = vadd.f32 %v458_v33, %v457_v32  ;;  %v726_v38 = vpop.eup %725  ;;  %vm465_vm3 = vcmask 253952  }
 0x276   : > { %s631_s15 = sshll.u32 %s959_s28, 4  ;;  %s329_s29 = scalar_lea.vmem [#allocation8], %s1074_s10 }
 0x277   : > { %v460_v35 = vrot.slane %v459_v34, 2  ;;  %s498_s20 = sshll.u32 %s329_s29, 4  ;;  %s1144_s21 = scalar_lea.hbm %s1195_s7, %s631_s15  ;;  %s1146_s20 = int_to_ptr.vmem [resolvable:$true] %s498_s20 }
 0x278   : > { %s473_s30 = scalar_lea.sflag [#allocation9], %s1074_s10  ;;  %s813_s14 = scalar_lea.vmem %s1146_s20, 16 }
 0x279   : > { %v461_v36 = vadd.f32 %v460_v35, %v459_v34  ;;  %p814_p13 = scmp.ne.s32.totalorder %s1146_s20, %s813_s14  ;;  %s897_s28 = smov [#allocation8]  }
 0x27a   : > { %s817_s22 = sshll.u32 %s897_s28, 4  ;;  %s818_s22 = int_to_ptr.vmem [resolvable:$false] %s817_s22 }
 0x27b   : > { %v462_v37 = vrot.slane %v461_v36, 1  ;;  %p815_p3 = pnand %p814_p13, %p1029_p12  ;;  %s819_s12 = scalar_lea.vmem %s818_s22, 32 }
 0x27c   : > { %p820_p9 = scmp.lt.s32.totalorder %s1146_s20, %s818_s22  ;;  %p821_p2 = scmp.lt.s32.totalorder %s819_s12, %s813_s14 }
 0x27d   : > { %v463_v39 = vadd.f32 %v462_v37, %v461_v36  ;;  %p816_p7 = pneg %p815_p3 }
 0x27e   : > { %p822_p5 = por %p821_p2, %p820_p9 }
 0x27f   : > { %v464_v40 = vmul.f32 %v726_v38, %v463_v39 }
 0x280   : > { %p823_p0 = pnand %p822_p5, %p816_p7 }
 0x281   : > { %466 = vst.msk [vmem:[%s329_s29] sm:$0x1] %vm465_vm3, %v464_v40 }
 0x282   : > { %826 = shalt.err (!%p823_p0)
}
 0x283   : > { %s827_s10 = scalar_lea.hbm %s1144_s21, 16  ;;  %s831_s16 = scalar_lea.hbm %s1195_s7, 32 }
 0x284   : > { %p828_p11 = scmp.ne.s32.totalorder %s1144_s21, %s827_s10  ;;  %p832_p6 = scmp.lt.u32.totalorder %s1144_s21, %s1195_s7 }
 0x285   : > { %p833_p8 = scmp.lt.u32.totalorder %s831_s16, %s827_s10  ;;  %p835_p13 = scmp.lt.u32.totalorder %s827_s10, %s1144_s21 }
 0x286   : > { %p829_p1 = pnand %p828_p11, %p1029_p12 }
 0x287   : > { %p834_p10 = por %p833_p8, %p832_p6 }
 0x288   : > { %p830_p4 = pneg %p829_p1 }
 0x289   : > { %p836_p3 = por %p835_p13, %p834_p10 }
 0x28b   : > { %p837_p7 = pnand %p836_p3, %p830_p4 }
 0x28d   : > { %840 = shalt.err (!%p837_p7)
}
 0x28e   : > { %663 = dma.vmem_to_hbm [thread:$0]  (%p1029_p12), %s1146_s20, 16, %s1144_s21, %s473_s30  }
 0x28f PF: > { %s510_s11 = sand.u32 1, %s875_s24   ;;  %p1210_p9 = scmp.ne.s32.totalorder %s1200_s8, 0 }
 0x290   : > { %p1211_p2 = scmp.ge.s32.totalorder %s887_s27, 2  ;;  %s511_s17 = scalar_lea.sflag [#allocation4], %s510_s11 }
 0x292   : > { %p675_p5 = pnand %p1211_p2, %p1210_p9 }
 0x294   : > { %866 = dma.done.wait (!%p675_p5), %s511_s17, 128  }
 0x295   : > { %868 = vsyncadd (!%p675_p5), %s511_s17, 4294967168  ;;  %s520_s14 = scalar_lea.sflag [#allocation9], %s510_s11 }
 0x296   : > { %870 = dma.done.wait (!%p675_p5), %s520_s14, 16  }
 0x297   : > { %872 = vsyncadd (!%p675_p5), %s520_s14, 4294967280  ;;  %p25_p12 = scmp.ge.s32.totalorder %s994_s13, 4   ;;  %s1212_s24 = smov %s879_s25 }
 0x298   : > { %s1213_s25 = smov %s883_s26  ;;  %s1214_s26 = smov %s1025_s18 }
 0x299   : > { %s1215_s27 = smov %s994_s13  ;;  %27 = sbr.rel (!%p25_p12) target bundleno = 8 (0x8), region = 113 }
 0x2a0   :  { %524 = vsyncpa [#allocation3], 1 }
 0x2a1   :  { %526 = vsyncpa [#allocation3 + $0x1], 1 }
 0x2a2   :  { %527 = vsyncpa [#allocation6], 1 }
 0x2a3   :  { %528 = vsyncpa [#allocation4], 1 }
 0x2a4   :  { %530 = vsyncpa [#allocation4 + $0x1], 1 }
 0x2a5   :  { %531 = vsyncpa [#allocation9], 1 }
 0x2a6   :  { %533 = vsyncpa [#allocation9 + $0x1], 1 }

</bundles_post_ra>
